<compile_context>
chip_gen: v7x
topology: tpu7x:2x2x1
jax: 0.10.0
libtpu: 0.0.40
codegen_flags: <defaults>
</compile_context>

<pallas_src>
import functools

import jax
import jax.numpy as jnp
import numpy as np
from jax.experimental import pallas as pl
from jax.experimental.pallas import tpu as pltpu

_LANES = 128
# (5, 1024, 128) f32 block ~= 2.6 MB/input; 2 inputs x 2 bufs + 2 out bufs ~= 11.5 MB VMEM.
_MAX_TILE_R = 1024
_VMEM_LIMIT = 32 * 1024 * 1024  # explicit: covers v5e's 16 MiB default scoped limit


def _bivariate_kld_kernel(inp_ref, tgt_ref, out_ref, *, eps, neg_det_weight):
    # inp_ref, tgt_ref: (5, tile_r, 128) VMEM tiles (native dtype); out_ref: (tile_r, 128) f32.
    def comp(ref, i):
        return ref[i].astype(jnp.float32)  # static leading-axis slice -> (tile_r, 128)

    mu_qlb, mu_qub = comp(inp_ref, 0), comp(inp_ref, 1)
    s_qlb, s_qub, s_qdur = comp(inp_ref, 2), comp(inp_ref, 3), comp(inp_ref, 4)
    mu_plb, mu_pub = comp(tgt_ref, 0), comp(tgt_ref, 1)
    s_plb, s_pub, s_pdur = comp(tgt_ref, 2), comp(tgt_ref, 3), comp(tgt_ref, 4)

    s_qlb2, s_qub2, s_qdur2 = s_qlb * s_qlb, s_qub * s_qub, s_qdur * s_qdur
    s_plb2, s_pub2, s_pdur2 = s_plb * s_plb, s_pub * s_pub, s_pdur * s_pdur

    # CSE: c = lb^2 + ub^2 - dur^2 is shared by pdf_det and normalized_mse;
    # sum = lb^2 + ub^2 is shared by pdf_det and the trace term.
    sum_q = s_qlb2 + s_qub2
    sum_p = s_plb2 + s_pub2
    c_q = sum_q - s_qdur2
    c_p = sum_p - s_pdur2

    pdf_det_q_raw = s_qlb2 * s_qub2 - 0.25 * c_q * c_q
    pdf_det_p_raw = s_plb2 * s_pub2 - 0.25 * c_p * c_p
    pdf_det_q = jnp.maximum(pdf_det_q_raw, eps)
    pdf_det_p = jnp.maximum(pdf_det_p_raw, eps)

    # Exact reciprocal: kernel is memory-bound, EUP slack is plentiful, keep numerics tight.
    inv_det_q = pl.reciprocal(pdf_det_q, approx=False)

    tr_pdfqinv_pdfp = inv_det_q * (
        0.5 * (sum_q + s_qdur2) * (sum_p + s_pdur2)
        - (s_qlb2 * s_plb2 + s_qub2 * s_pub2 + s_qdur2 * s_pdur2)
    )

    del_lb = mu_qlb - mu_plb
    del_ub = mu_qub - mu_pub

    normalized_mse = inv_det_q * (
        del_lb * del_lb * s_qub2
        + del_ub * del_ub * s_qlb2
        - del_lb * del_ub * c_q
    )
    normalized_mse2 = (
        del_lb * del_lb / jnp.maximum(s_qlb2, eps)
        + del_ub * del_ub / jnp.maximum(s_qub2, eps)
    )
    normalized_mse = jnp.where(pdf_det_q_raw >= eps, normalized_mse, normalized_mse2)

    # Single log of the ratio instead of log(q) - log(p): one fewer EUP op.
    loss = 0.5 * (
        jnp.log(pdf_det_q / pdf_det_p) - 2.0 + tr_pdfqinv_pdfp + normalized_mse
    )

    if neg_det_weight:  # static Python truthiness, mirrors the PyTorch `if`
        relu_q = jnp.maximum(eps - pdf_det_q_raw, 0.0)
        relu_p = jnp.maximum(eps - pdf_det_p_raw, 0.0)
        loss = loss + neg_det_weight * relu_q * relu_q \
                    + neg_det_weight * relu_p * relu_p

    out_ref[...] = loss


def _choose_tiling(n):
    """Return (r_pad, tile_r): rows of 128 lanes, padded so tile_r | r_pad."""
    r = -(-n // _LANES)  # ceil(n / 128)
    if r <= 8:
        return r, r  # single full-extent block (no 8-divisibility needed)
    # tile_r: multiple of 8, capped at _MAX_TILE_R, and >=2 grid steps so both
    # v7x TensorCores get work under dimension_semantics=("parallel",).
    tile_r = min(_MAX_TILE_R, max(8, (r // 2) // 8 * 8))
    r_pad = ((r + tile_r - 1) // tile_r) * tile_r
    return r_pad, tile_r


@functools.partial(jax.jit, static_argnames=("eps", "neg_det_weight"))
def bivariate_kld_loss(inp, tgt, *, eps=0.1, neg_det_weight=1.0):
    assert inp.shape[-1] == 5
    assert tgt.shape[-1] == 5
    lead = inp.shape[:-1]
    n = int(np.prod(lead)) if lead else 1

    r_pad, tile_r = _choose_tiling(n)
    n_pad = r_pad * _LANES

    def relayout(a):
        # (..., 5) -> (5, r_pad, 128), native dtype (no f32 upcast in HBM).
        # Under jit the transpose + pad + reshape fuse into a single relayout pass.
        a2 = jnp.reshape(a, (n, 5)).T  # (5, n)
        if n_pad != n:
            a2 = jnp.pad(a2, ((0, 0), (0, n_pad - n)))
        return a2.reshape(5, r_pad, _LANES)

    x = relayout(inp)
    t = relayout(tgt)

    kernel = functools.partial(
        _bivariate_kld_kernel, eps=float(eps), neg_det_weight=float(neg_det_weight)
    )

    out = pl.pallas_call(
        kernel,
        out_shape=jax.ShapeDtypeStruct((r_pad, _LANES), jnp.float32),
        grid=(r_pad // tile_r,),
        in_specs=[
            pl.BlockSpec((5, tile_r, _LANES), lambda i: (0, i, 0)),
            pl.BlockSpec((5, tile_r, _LANES), lambda i: (0, i, 0)),
        ],
        out_specs=pl.BlockSpec((tile_r, _LANES), lambda i: (i, 0)),
        compiler_params=pltpu.CompilerParams(
            dimension_semantics=("parallel",),
            vmem_limit_bytes=_VMEM_LIMIT,
        ),
    )(x, t)

    # Return f32 loss (avoids precision loss if callers reduce it afterwards).
    flat = out.reshape(n_pad)
    if n_pad != n:
        flat = flat[:n]
    return flat.reshape(lead)


def _reference(inp, tgt, eps=0.1, neg_det_weight=1.0):
    # Pure-JAX reference mirroring the PyTorch forward (for verification only).
    inp = inp.astype(jnp.float32)
    tgt = tgt.astype(jnp.float32)
    mu_qlb, mu_qub, s_qlb, s_qub, s_qdur = [inp[..., i] for i in range(5)]
    mu_plb, mu_pub, s_plb, s_pub, s_pdur = [tgt[..., i] for i in range(5)]

    def pdf_det(a, b, d):
        return a**2 * b**2 - 0.25 * (a**2 + b**2 - d**2) ** 2

    qraw = pdf_det(s_qlb, s_qub, s_qdur)
    praw = pdf_det(s_plb, s_pub, s_pdur)
    q = jnp.maximum(qraw, eps)
    p = jnp.maximum(praw, eps)
    tr = 1.0 / q * (
        0.5 * (s_qlb**2 + s_qub**2 + s_qdur**2) * (s_plb**2 + s_pub**2 + s_pdur**2)
        - (s_qlb**2 * s_plb**2 + s_qub**2 * s_pub**2 + s_qdur**2 * s_pdur**2)
    )
    dl = mu_qlb - mu_plb
    du = mu_qub - mu_pub
    nm = 1.0 / q * (dl**2 * s_qub**2 + du**2 * s_qlb**2
                    - dl * du * (s_qlb**2 + s_qub**2 - s_qdur**2))
    nm2 = dl**2 / jnp.maximum(s_qlb**2, eps) + du**2 / jnp.maximum(s_qub**2, eps)
    nm = jnp.where(qraw >= eps, nm, nm2)
    loss = 0.5 * (jnp.log(q) - jnp.log(p) - 2 + tr + nm)
    loss = loss + neg_det_weight * jnp.maximum(eps - qraw, 0.0) ** 2 \
                + neg_det_weight * jnp.maximum(eps - praw, 0.0) ** 2
    return loss


if __name__ == "__main__":
    key = jax.random.PRNGKey(0)

    # Small shape consistent with the module: (batch=2, seq=8, 5).
    k1, k2, k3, k4 = jax.random.split(key, 4)
    batch, seq = 2, 8
    inp = jax.random.normal(k1, (batch, seq, 5), dtype=jnp.float32)
    tgt = jax.random.normal(k2, (batch, seq, 5), dtype=jnp.float32)

    out = jax.block_until_ready(bivariate_kld_loss(inp, tgt))
    ref = _reference(inp, tgt)
    np.testing.assert_allclose(np.asarray(out), np.asarray(ref), rtol=1e-5, atol=1e-5)
    assert out.shape == (batch, seq)

    # Slightly larger case to exercise the multi-step (tiled) grid path.
    inp2 = jax.random.normal(k3, (4, 1024, 5), dtype=jnp.float32)
    tgt2 = jax.random.normal(k4, (4, 1024, 5), dtype=jnp.float32)
    out2 = jax.block_until_ready(bivariate_kld_loss(inp2, tgt2))
    ref2 = _reference(inp2, tgt2)
    np.testing.assert_allclose(np.asarray(out2), np.asarray(ref2), rtol=1e-5, atol=1e-5)
    assert out2.shape == (4, 1024)

    print("KERNEL_OK")
</pallas_src>

<mosaic_0001>
module attributes {stable_mosaic.version = 11 : i64} {
  func.func @_bivariate_kld_kernel(%arg0: i32, %arg1: memref<5x1x128xf32, #tpu.memory_space<vmem>>, %arg2: memref<5x1x128xf32, #tpu.memory_space<vmem>>, %arg3: memref<1x128xf32, #tpu.memory_space<vmem>>) attributes {dimension_semantics = [#tpu.dimension_semantics<parallel>], iteration_bounds = array<i64: 1>, scalar_prefetch = 0 : i64, scratch_operands = 0 : i64, tpu.core_type = #tpu.core_type<tc>, window_params = [{transform_indices = @transform_0, window_bounds = array<i64: 5, 1, 128>}, {transform_indices = @transform_1, window_bounds = array<i64: 5, 1, 128>}, {transform_indices = @transform_2, window_bounds = array<i64: 1, 128>}]} {
    %c0 = arith.constant 0 : index
    %c0_0 = arith.constant 0 : index
    %c0_1 = arith.constant 0 : index
    %0 = vector.load %arg1[%c0, %c0_0, %c0_1] : memref<5x1x128xf32, #tpu.memory_space<vmem>>, vector<1x1x128xf32>
    %1 = vector.shape_cast %0 : vector<1x1x128xf32> to vector<1x128xf32>
    %c1 = arith.constant 1 : index
    %c0_2 = arith.constant 0 : index
    %c0_3 = arith.constant 0 : index
    %2 = vector.load %arg1[%c1, %c0_2, %c0_3] : memref<5x1x128xf32, #tpu.memory_space<vmem>>, vector<1x1x128xf32>
    %3 = vector.shape_cast %2 : vector<1x1x128xf32> to vector<1x128xf32>
    %c2 = arith.constant 2 : index
    %c0_4 = arith.constant 0 : index
    %c0_5 = arith.constant 0 : index
    %4 = vector.load %arg1[%c2, %c0_4, %c0_5] : memref<5x1x128xf32, #tpu.memory_space<vmem>>, vector<1x1x128xf32>
    %5 = vector.shape_cast %4 : vector<1x1x128xf32> to vector<1x128xf32>
    %c3 = arith.constant 3 : index
    %c0_6 = arith.constant 0 : index
    %c0_7 = arith.constant 0 : index
    %6 = vector.load %arg1[%c3, %c0_6, %c0_7] : memref<5x1x128xf32, #tpu.memory_space<vmem>>, vector<1x1x128xf32>
    %7 = vector.shape_cast %6 : vector<1x1x128xf32> to vector<1x128xf32>
    %c4 = arith.constant 4 : index
    %c0_8 = arith.constant 0 : index
    %c0_9 = arith.constant 0 : index
    %8 = vector.load %arg1[%c4, %c0_8, %c0_9] : memref<5x1x128xf32, #tpu.memory_space<vmem>>, vector<1x1x128xf32>
    %9 = vector.shape_cast %8 : vector<1x1x128xf32> to vector<1x128xf32>
    %c0_10 = arith.constant 0 : index
    %c0_11 = arith.constant 0 : index
    %c0_12 = arith.constant 0 : index
    %10 = vector.load %arg2[%c0_10, %c0_11, %c0_12] : memref<5x1x128xf32, #tpu.memory_space<vmem>>, vector<1x1x128xf32>
    %11 = vector.shape_cast %10 : vector<1x1x128xf32> to vector<1x128xf32>
    %c1_13 = arith.constant 1 : index
    %c0_14 = arith.constant 0 : index
    %c0_15 = arith.constant 0 : index
    %12 = vector.load %arg2[%c1_13, %c0_14, %c0_15] : memref<5x1x128xf32, #tpu.memory_space<vmem>>, vector<1x1x128xf32>
    %13 = vector.shape_cast %12 : vector<1x1x128xf32> to vector<1x128xf32>
    %c2_16 = arith.constant 2 : index
    %c0_17 = arith.constant 0 : index
    %c0_18 = arith.constant 0 : index
    %14 = vector.load %arg2[%c2_16, %c0_17, %c0_18] : memref<5x1x128xf32, #tpu.memory_space<vmem>>, vector<1x1x128xf32>
    %15 = vector.shape_cast %14 : vector<1x1x128xf32> to vector<1x128xf32>
    %c3_19 = arith.constant 3 : index
    %c0_20 = arith.constant 0 : index
    %c0_21 = arith.constant 0 : index
    %16 = vector.load %arg2[%c3_19, %c0_20, %c0_21] : memref<5x1x128xf32, #tpu.memory_space<vmem>>, vector<1x1x128xf32>
    %17 = vector.shape_cast %16 : vector<1x1x128xf32> to vector<1x128xf32>
    %c4_22 = arith.constant 4 : index
    %c0_23 = arith.constant 0 : index
    %c0_24 = arith.constant 0 : index
    %18 = vector.load %arg2[%c4_22, %c0_23, %c0_24] : memref<5x1x128xf32, #tpu.memory_space<vmem>>, vector<1x1x128xf32>
    %19 = vector.shape_cast %18 : vector<1x1x128xf32> to vector<1x128xf32>
    %20 = arith.mulf %5, %5 : vector<1x128xf32>
    %21 = arith.mulf %7, %7 : vector<1x128xf32>
    %22 = arith.mulf %9, %9 : vector<1x128xf32>
    %23 = arith.mulf %15, %15 : vector<1x128xf32>
    %24 = arith.mulf %17, %17 : vector<1x128xf32>
    %25 = arith.mulf %19, %19 : vector<1x128xf32>
    %26 = arith.addf %20, %21 : vector<1x128xf32>
    %27 = arith.addf %23, %24 : vector<1x128xf32>
    %28 = arith.subf %26, %22 : vector<1x128xf32>
    %29 = arith.subf %27, %25 : vector<1x128xf32>
    %30 = arith.mulf %20, %21 : vector<1x128xf32>
    %cst = arith.constant 2.500000e-01 : f32
    %31 = vector.broadcast %cst : f32 to vector<1x128xf32>
    %32 = arith.mulf %31, %28 : vector<1x128xf32>
    %33 = arith.mulf %32, %28 : vector<1x128xf32>
    %34 = arith.subf %30, %33 : vector<1x128xf32>
    %35 = arith.mulf %23, %24 : vector<1x128xf32>
    %cst_25 = arith.constant 2.500000e-01 : f32
    %36 = vector.broadcast %cst_25 : f32 to vector<1x128xf32>
    %37 = arith.mulf %36, %29 : vector<1x128xf32>
    %38 = arith.mulf %37, %29 : vector<1x128xf32>
    %39 = arith.subf %35, %38 : vector<1x128xf32>
    %cst_26 = arith.constant 1.000000e-01 : f32
    %40 = vector.broadcast %cst_26 : f32 to vector<1x128xf32>
    %41 = arith.maximumf %34, %40 : vector<1x128xf32>
    %cst_27 = arith.constant 1.000000e-01 : f32
    %42 = vector.broadcast %cst_27 : f32 to vector<1x128xf32>
    %43 = arith.maximumf %39, %42 : vector<1x128xf32>
    %44 = tpu.reciprocal %41 : vector<1x128xf32> -> vector<1x128xf32>
    %45 = arith.addf %26, %22 : vector<1x128xf32>
    %cst_28 = arith.constant 5.000000e-01 : f32
    %46 = vector.broadcast %cst_28 : f32 to vector<1x128xf32>
    %47 = arith.mulf %46, %45 : vector<1x128xf32>
    %48 = arith.addf %27, %25 : vector<1x128xf32>
    %49 = arith.mulf %47, %48 : vector<1x128xf32>
    %50 = arith.mulf %20, %23 : vector<1x128xf32>
    %51 = arith.mulf %21, %24 : vector<1x128xf32>
    %52 = arith.addf %50, %51 : vector<1x128xf32>
    %53 = arith.mulf %22, %25 : vector<1x128xf32>
    %54 = arith.addf %52, %53 : vector<1x128xf32>
    %55 = arith.subf %49, %54 : vector<1x128xf32>
    %56 = arith.mulf %44, %55 : vector<1x128xf32>
    %57 = arith.subf %1, %11 : vector<1x128xf32>
    %58 = arith.subf %3, %13 : vector<1x128xf32>
    %59 = arith.mulf %57, %57 : vector<1x128xf32>
    %60 = arith.mulf %59, %21 : vector<1x128xf32>
    %61 = arith.mulf %58, %58 : vector<1x128xf32>
    %62 = arith.mulf %61, %20 : vector<1x128xf32>
    %63 = arith.addf %60, %62 : vector<1x128xf32>
    %64 = arith.mulf %57, %58 : vector<1x128xf32>
    %65 = arith.mulf %64, %28 : vector<1x128xf32>
    %66 = arith.subf %63, %65 : vector<1x128xf32>
    %67 = arith.mulf %44, %66 : vector<1x128xf32>
    %68 = arith.mulf %57, %57 : vector<1x128xf32>
    %cst_29 = arith.constant 1.000000e-01 : f32
    %69 = vector.broadcast %cst_29 : f32 to vector<1x128xf32>
    %70 = arith.maximumf %20, %69 : vector<1x128xf32>
    %71 = arith.divf %68, %70 : vector<1x128xf32>
    %72 = arith.mulf %58, %58 : vector<1x128xf32>
    %cst_30 = arith.constant 1.000000e-01 : f32
    %73 = vector.broadcast %cst_30 : f32 to vector<1x128xf32>
    %74 = arith.maximumf %21, %73 : vector<1x128xf32>
    %75 = arith.divf %72, %74 : vector<1x128xf32>
    %76 = arith.addf %71, %75 : vector<1x128xf32>
    %cst_31 = arith.constant 1.000000e-01 : f32
    %77 = vector.broadcast %cst_31 : f32 to vector<1x128xf32>
    %78 = arith.cmpf oge, %34, %77 : vector<1x128xf32>
    %79 = arith.select %78, %67, %76 : vector<1x128xi1>, vector<1x128xf32>
    %80 = arith.divf %41, %43 : vector<1x128xf32>
    %81 = math.log %80 : vector<1x128xf32>
    %cst_32 = arith.constant 2.000000e+00 : f32
    %82 = vector.broadcast %cst_32 : f32 to vector<1x128xf32>
    %83 = arith.subf %81, %82 : vector<1x128xf32>
    %84 = arith.addf %83, %56 : vector<1x128xf32>
    %85 = arith.addf %84, %79 : vector<1x128xf32>
    %cst_33 = arith.constant 5.000000e-01 : f32
    %86 = vector.broadcast %cst_33 : f32 to vector<1x128xf32>
    %87 = arith.mulf %86, %85 : vector<1x128xf32>
    %cst_34 = arith.constant 1.000000e-01 : f32
    %88 = vector.broadcast %cst_34 : f32 to vector<1x128xf32>
    %89 = arith.subf %88, %34 : vector<1x128xf32>
    %cst_35 = arith.constant 0.000000e+00 : f32
    %90 = vector.broadcast %cst_35 : f32 to vector<1x128xf32>
    %91 = arith.maximumf %89, %90 : vector<1x128xf32>
    %cst_36 = arith.constant 1.000000e-01 : f32
    %92 = vector.broadcast %cst_36 : f32 to vector<1x128xf32>
    %93 = arith.subf %92, %39 : vector<1x128xf32>
    %cst_37 = arith.constant 0.000000e+00 : f32
    %94 = vector.broadcast %cst_37 : f32 to vector<1x128xf32>
    %95 = arith.maximumf %93, %94 : vector<1x128xf32>
    %cst_38 = arith.constant 1.000000e+00 : f32
    %96 = vector.broadcast %cst_38 : f32 to vector<1x128xf32>
    %97 = arith.mulf %96, %91 : vector<1x128xf32>
    %98 = arith.mulf %97, %91 : vector<1x128xf32>
    %99 = arith.addf %87, %98 : vector<1x128xf32>
    %cst_39 = arith.constant 1.000000e+00 : f32
    %100 = vector.broadcast %cst_39 : f32 to vector<1x128xf32>
    %101 = arith.mulf %100, %95 : vector<1x128xf32>
    %102 = arith.mulf %101, %95 : vector<1x128xf32>
    %103 = arith.addf %99, %102 : vector<1x128xf32>
    %c0_40 = arith.constant 0 : index
    %c0_41 = arith.constant 0 : index
    %104 = vector.load %arg3[%c0_40, %c0_41] : memref<1x128xf32, #tpu.memory_space<vmem>>, vector<1x128xf32>
    tpu.vector_store %arg3[%c0_40, %c0_41], %103 {strides = array<i32>} : memref<1x128xf32, #tpu.memory_space<vmem>>, vector<1x128xf32>,
    return
  }
  func.func @transform_0(%arg0: i32) -> (i32, i32, i32) {
    %c0_i32 = arith.constant 0 : i32
    %c0_i32_0 = arith.constant 0 : i32
    %c0_i32_1 = arith.constant 0 : i32
    return %c0_i32, %arg0, %c0_i32_0 : i32, i32, i32
  }
  func.func @transform_1(%arg0: i32) -> (i32, i32, i32) {
    %c0_i32 = arith.constant 0 : i32
    %c0_i32_0 = arith.constant 0 : i32
    %c0_i32_1 = arith.constant 0 : i32
    return %c0_i32, %arg0, %c0_i32_0 : i32, i32, i32
  }
  func.func @transform_2(%arg0: i32) -> (i32, i32) {
    %c0_i32 = arith.constant 0 : i32
    %c0_i32_0 = arith.constant 0 : i32
    return %arg0, %c0_i32 : i32, i32
  }
}

</mosaic_0001>

<bundles_post_ra>
// kernel: bivariate_kld_loss.1
= control target key start
LH: loop header
LB: loop body
LE: loop exit
PB: predicated region body
PF: predicated region fallthrough
CT: control target
= control target key end

     0   :  { %s169_s0 = inlined_call_operand.vmem [shape: f32[5,1,128], index: 0, kind: input, shape index: {}]   ;;  %s170_s1 = inlined_call_operand.vmem [shape: f32[5,1,128], index: 1, kind: input, shape index: {}]   ;;  %s171_s2 = inlined_call_operand.vmem [shape: f32[1,128], index: 2, kind: output, shape index: {}]  }
   0x1   :  { %v103_v0 = vld [vmem:[%s169_s0 + $0x2] sm:$0x1]  ;;  %v104_v1 = vld [vmem:[%s169_s0 + $0x3] sm:$0x1]  ;;  %v105_v2 = vld [vmem:[%s169_s0 + $0x4] sm:$0x1] }
   0x2   :  { %v29_v3 = vmul.f32 %v103_v0, %v103_v0  ;;  %v107_v4 = vld [vmem:[%s170_s1 + $0x2] sm:$0x1]  ;;  %v108_v5 = vld [vmem:[%s170_s1 + $0x3] sm:$0x1]  ;;  %v30_v6 = vmul.f32 %v104_v1, %v104_v1  ;;  %v109_v7 = vld [vmem:[%s170_s1 + $0x4] sm:$0x1]  ;;  %v31_v10 = vmul.f32 %v105_v2, %v105_v2 }
   0x3   :  { %v32_v8 = vmul.f32 %v107_v4, %v107_v4  ;;  %v33_v9 = vmul.f32 %v108_v5, %v108_v5  ;;  %v34_v11 = vmul.f32 %v109_v7, %v109_v7  ;;  %v11_v22 = vld [vmem:[%s169_s0] sm:$0x1]  ;;  %v102_v25 = vld [vmem:[%s169_s0 + $0x1] sm:$0x1] }
   0x4   :  { %v35_v12 = vadd.f32 %v30_v6, %v29_v3  ;;  %v39_v23 = vmul.f32 %v30_v6, %v29_v3  ;;  %v20_v26 = vld [vmem:[%s170_s1] sm:$0x1]  ;;  %v106_v27 = vld [vmem:[%s170_s1 + $0x1] sm:$0x1]  ;;  %v72_v28 = vmax.f32 %v29_v3, 0.1 }
   0x5   :  { %v36_v13 = vadd.f32 %v33_v9, %v32_v8  ;;  %v43_v16 = vmul.f32 %v33_v9, %v32_v8  ;;  %v75_v29 = vmax.f32 %v30_v6, 0.1  ;;  %v61_v31 = vsub.f32 %v11_v22, %v20_v26 }
   0x6   :  { %v37_v15 = vsub.f32 %v35_v12, %v31_v10  ;;  %v62_v32 = vsub.f32 %v102_v25, %v106_v27  ;;  %v50_v36 = vadd.f32 %v35_v12, %v31_v10  ;;  %v54_v37 = vmul.f32 %v32_v8, %v29_v3 }
   0x7   :  { %v38_v14 = vsub.f32 %v36_v13, %v34_v11  ;;  %v63_v34 = vmul.f32 %v61_v31, %v61_v31  ;;  %v55_v38 = vmul.f32 %v33_v9, %v30_v6  ;;  %v52_v45 = vadd.f32 %v36_v13, %v34_v11 }
   0x8   :  { %v40_v19 = vmul.f32 0.25, %v37_v15  ;;  %v65_v35 = vmul.f32 %v62_v32, %v62_v32  ;;  %v68_v42 = vmul.f32 %v62_v32, %v61_v31  ;;  %v51_v44 = vmul.f32 0.5, %v50_v36 }
   0x9   :  { %v44_v17 = vmul.f32 0.25, %v38_v14  ;;  %v64_v40 = vmul.f32 %v63_v34, %v30_v6  ;;  %v56_v46 = vadd.f32 %v55_v38, %v54_v37  ;;  %v57_v47 = vmul.f32 %v34_v11, %v31_v10 }
   0xa   :  { %v41_v24 = vmul.f32 %v40_v19, %v37_v15  ;;  %v66_v41 = vmul.f32 %v65_v35, %v29_v3  ;;  %v69_v50 = vmul.f32 %v68_v42, %v37_v15  ;;  %v53_v52 = vmul.f32 %v52_v45, %v51_v44 }
   0xb   :  { %v45_v18 = vmul.f32 %v44_v17, %v38_v14  ;;  %v58_v53 = vadd.f32 %v57_v47, %v56_v46 }
   0xc   :  { %v42_v30 = vsub.f32 %v39_v23, %v41_v24  ;;  %v67_v49 = vadd.f32 %v66_v41, %v64_v40 }
   0xd   :  { %v46_v20 = vsub.f32 %v43_v16, %v45_v18  ;;  %v59_v58 = vsub.f32 %v53_v52, %v58_v53 }
   0xe   :  { %v47_v33 = vmax.f32 %v42_v30, 0.1  ;;  %v70_v54 = vsub.f32 %v67_v49, %v69_v50  ;;  %v89_v59 = vsub.f32 0.1, %v42_v30  ;;  %vm79_vm0 = vcmp.ge.f32.partialorder %v42_v30, 0.1 }
   0xf   :  { %v48_v21 = vmax.f32 %v46_v20, 0.1  ;;  %v91_v1 = vsub.f32 0.1, %v46_v20 }
  0x10   :  { %v90_v3 = vmax.f32 %v89_v59, 0.0 }
  0x11   :  { %111 = vrcp.f32 %v48_v21  ;;  %v92_v6 = vmax.f32 %v91_v1, 0.0 }
  0x12   :  { %113 = vrcp.f32 %v72_v28  ;;  %v93_v8 = vmul.f32 %v90_v3, %v90_v3 }
  0x13   :  { %115 = vrcp.f32 %v75_v29  ;;  %v95_v10 = vmul.f32 %v92_v6, %v92_v6 }
  0x14   :  { %117 = vrcp.f32 %v47_v33 }
  0x1b   :  { %v112_v39 = vpop.eup %111 }
  0x1c   :  { %v82_v43 = vmul.f32 %v112_v39, %v47_v33  ;;  %v114_v48 = vpop.eup %113 }
  0x1d   :  { %v116_v51 = vpop.eup %115  ;;  %v74_v55 = vmul.f32 %v114_v48, %v63_v34 }
  0x1e   :  { %119 = vlog2.f32 %v82_v43  ;;  %v77_v56 = vmul.f32 %v116_v51, %v65_v35  ;;  %v118_v57 = vpop.eup %117 }
  0x1f   :  { %v71_v61 = vmul.f32 %v118_v57, %v70_v54  ;;  %v60_v63 = vmul.f32 %v118_v57, %v59_v58 }
  0x20   :  { %v78_v62 = vadd.f32 %v77_v56, %v74_v55 }
  0x22   :  { %v80_v4 = vsel %vm79_vm0, %v71_v61, %v78_v62 }
  0x28   :  { %v120_v60 = vpop.eup %119 }
  0x29   :  { %v84_v0 = vmul.f32 0.6931472, %v120_v60 }
  0x2b   :  { %v110_v2 = vadd.f32 -2.0, %v84_v0 }
  0x2d   :  { %v86_v5 = vadd.f32 %v110_v2, %v60_v63 }
  0x2f   :  { %v87_v7 = vadd.f32 %v86_v5, %v80_v4 }
  0x31   :  { %v88_v9 = vmul.f32 0.5, %v87_v7 }
  0x33   :  { %v94_v11 = vadd.f32 %v93_v8, %v88_v9 }
  0x35   :  { %v96_v12 = vadd.f32 %v95_v10, %v94_v11 }
  0x37   :  { %97 = vst [vmem:[%s171_s2] sm:$0x1] %v96_v12 }

</bundles_post_ra>
